<compile_context>
chip_gen: v5e
topology: v5e:2x2
jax: 0.10.0
libtpu: 0.0.40
codegen_flags: <defaults>
</compile_context>

<pallas_src>
import functools

import jax
import jax.numpy as jnp
from jax.experimental import pallas as pl
from jax.experimental.pallas import tpu as pltpu


def _round_up(x, m):
    return (x + m - 1) // m * m


def _cdiv(a, b):
    return -(-a // b)


# ---------------------------------------------------------------------------
# Kernels
# ---------------------------------------------------------------------------

def _ensemble_small_kernel(x_ref, wt_ref, b_ref, mw_ref, mb_ref, o_ref, *,
                           compute_dtype):
    """Single-block fast path: whole problem resident in VMEM."""
    x = x_ref[...].astype(compute_dtype)                          # (B, D)
    wt = wt_ref[...].astype(compute_dtype)                        # (M, D)
    # x @ W  ==  dot_general contracting the D (last) axis of both operands.
    logits = jax.lax.dot_general(
        x, wt, dimension_numbers=(((1,), (1,)), ((), ())),
        preferred_element_type=jnp.float32)                       # (B, M) f32
    logits = logits + b_ref[...].astype(jnp.float32)
    probs = jax.nn.sigmoid(logits)                                # f32 (EUP)
    # Degenerate (M, 1) matmul -> VPU multiply + cross-lane reduce.
    mw_row = mw_ref[...].astype(jnp.float32)                      # (1, M)
    out = jnp.sum(probs * mw_row, axis=-1, keepdims=True)         # (B, 1)
    o_ref[...] = (out + mb_ref[...].astype(jnp.float32)).astype(o_ref.dtype)


def _ensemble_tiled_kernel(x_ref, wt_ref, b_ref, mw_ref, mb_ref, o_ref,
                           acc_ref, *, compute_dtype, d_total, needs_mask):
    """Tiled path: grid = (cdiv(B,TB), cdiv(D,TD)); D (reduction) is last."""
    k = pl.program_id(1)

    @pl.when(k == 0)
    def _init():
        acc_ref[...] = jnp.zeros_like(acc_ref)

    x_t = x_ref[...]                                              # (TB, TD) f32
    w_t = wt_ref[...]                                             # (M, TD)  f32
    if needs_mask:
        # Last D tile may read past D: zero both operands (OOB reads are
        # undefined and could be NaN, so zeroing only one side is not enough).
        td = x_ref.shape[-1]
        col = k * td + jax.lax.broadcasted_iota(jnp.int32, (1, td), 1)
        valid = col < d_total
        x_t = jnp.where(valid, x_t, 0.0)
        w_t = jnp.where(valid, w_t, 0.0)

    # Partial base-model logits for this D-slab, accumulated in f32.
    acc_ref[...] += jax.lax.dot_general(
        x_t.astype(compute_dtype), w_t.astype(compute_dtype),
        dimension_numbers=(((1,), (1,)), ((), ())),
        preferred_element_type=jnp.float32)                       # (TB, M)

    @pl.when(k == pl.num_programs(1) - 1)
    def _finalize():
        logits = acc_ref[...] + b_ref[...].astype(jnp.float32)    # (TB, M) f32
        probs = jax.nn.sigmoid(logits)                            # f32 (EUP)
        mw_row = mw_ref[...].astype(jnp.float32)                  # (1, M)
        out = jnp.sum(probs * mw_row, axis=-1, keepdims=True)     # (TB, 1)
        o_ref[...] = (out + mb_ref[...].astype(jnp.float32)).astype(o_ref.dtype)


# ---------------------------------------------------------------------------
# Wrapper
# ---------------------------------------------------------------------------

def ensemble2d_forward(x, w_all, b_all, meta_w, meta_b, *,
                       tb=512, td=2048, compute_dtype=jnp.bfloat16):
    """x: (B, C, H, W).  Returns (B, 1) f32."""
    B = x.shape[0]
    D = 1
    for s in x.shape[1:]:
        D *= int(s)
    M = int(w_all.shape[-1])

    x_flat = x.reshape(B, D)                        # native dtype, no cast/pad
    w_t = jnp.transpose(w_all)                      # (M, D): D on the lane axis
    b_row = b_all.reshape(1, M).astype(jnp.float32)
    mw_row = meta_w.reshape(1, M).astype(jnp.float32)
    mb_11 = meta_b.reshape(1, 1).astype(jnp.float32)

    itemsize = jnp.dtype(x_flat.dtype).itemsize
    flops = 2 * B * D * M + 3 * B * M

    # ----------------------- fast path: single block ----------------------
    b_pad = _round_up(max(B, 1), 8)
    d_pad = _round_up(max(D, 1), 128)
    small_vmem = (b_pad * d_pad + _round_up(M, 8) * d_pad) * itemsize
    if small_vmem <= (8 << 20):
        cost = pl.CostEstimate(
            flops=flops, transcendentals=B * M,
            bytes_accessed=itemsize * (B * D + M * D) + 4 * (2 * M + 1 + B))
        kernel = functools.partial(_ensemble_small_kernel,
                                   compute_dtype=compute_dtype)
        return pl.pallas_call(
            kernel,
            out_shape=jax.ShapeDtypeStruct((B, 1), jnp.float32),
            in_specs=[
                pl.BlockSpec((B, D), lambda: (0, 0)),     # x (native dtype)
                pl.BlockSpec((M, D), lambda: (0, 0)),     # W^T
                pl.BlockSpec((1, M), lambda: (0, 0)),     # b_all
                pl.BlockSpec((1, M), lambda: (0, 0)),     # meta_w
                pl.BlockSpec((1, 1), lambda: (0, 0)),     # meta_b
            ],
            out_specs=pl.BlockSpec((B, 1), lambda: (0, 0)),
            cost_estimate=cost,
        )(x_flat, w_t, b_row, mw_row, mb_11)

    # --------------------------- tiled path -------------------------------
    tb = _round_up(max(tb, 8), 8)
    td = _round_up(max(td, 128), 128)

    # D (reduction) tile: multiple of 128 (or full D); prefer one dividing D
    # so no tail masking is needed (Pallas does not zero OOB input reads).
    if D <= td:
        td_eff, needs_mask = D, False
    else:
        td_eff, needs_mask = td, (D % td != 0)
        cand = td
        while cand >= max(128, td // 4):
            if D % cand == 0:
                td_eff, needs_mask = cand, False
                break
            cand -= 128

    # B tile: multiple of 8; ensure >=2 i-blocks (v7x shards the "parallel"
    # axis over 2 TensorCores) whenever halving keeps >= ~1 MiB x slabs.
    tb_eff = min(tb, _round_up(B, 8))
    half_tb = _round_up(_cdiv(B, 2), 8)
    if half_tb * td_eff * itemsize >= (1 << 20):
        tb_eff = min(tb_eff, half_tb)

    grid = (_cdiv(B, tb_eff), _cdiv(D, td_eff))

    # VMEM budget with lane/sublane padding accounted for (narrow-M buffers
    # pad to 128 lanes; the (M, TD) W^T buffer pads M to 8 sublanes).
    vmem_need = (2 * tb_eff * td_eff * itemsize            # x double-buffer
                 + 2 * _round_up(M, 8) * td_eff * itemsize  # W^T double-buffer
                 + 2 * tb_eff * 128 * 4                     # out double-buffer
                 + tb_eff * _round_up(M, 128) * 4           # acc scratch
                 + (2 << 20))                               # bias/meta/slack
    vmem_limit = int(min(max(vmem_need, 16 << 20), 48 << 20))

    cost = pl.CostEstimate(
        flops=flops, transcendentals=B * M,
        bytes_accessed=itemsize * (B * D + grid[0] * M * D)
                       + 4 * (2 * M + 1 + B))

    kernel = functools.partial(_ensemble_tiled_kernel,
                               compute_dtype=compute_dtype,
                               d_total=D, needs_mask=needs_mask)
    return pl.pallas_call(
        kernel,
        out_shape=jax.ShapeDtypeStruct((B, 1), jnp.float32),
        grid_spec=pltpu.PrefetchScalarGridSpec(
            num_scalar_prefetch=0,
            grid=grid,
            in_specs=[
                pl.BlockSpec((tb_eff, td_eff), lambda i, k: (i, k)),  # x
                pl.BlockSpec((M, td_eff), lambda i, k: (0, k)),       # W^T
                pl.BlockSpec((1, M), lambda i, k: (0, 0)),            # b_all
                pl.BlockSpec((1, M), lambda i, k: (0, 0)),            # meta_w
                pl.BlockSpec((1, 1), lambda i, k: (0, 0)),            # meta_b
            ],
            out_specs=pl.BlockSpec((tb_eff, 1), lambda i, k: (i, 0)),
            scratch_shapes=[pltpu.VMEM((tb_eff, M), jnp.float32)],
        ),
        compiler_params=pltpu.CompilerParams(
            dimension_semantics=("parallel", "arbitrary"),
            vmem_limit_bytes=vmem_limit),
        cost_estimate=cost,
    )(x_flat, w_t, b_row, mw_row, mb_11)


# ---------------------------------------------------------------------------
# Deterministic synthetic parameters + plain-JAX reference
# ---------------------------------------------------------------------------

def make_params(key, num_models, in_features):
    """Stacked Linear(D,1) base models + Linear(M,1) meta head."""
    k1, k2, k3, k4 = jax.random.split(key, 4)
    w_all = jax.random.normal(k1, (in_features, num_models), jnp.float32) * 0.02
    b_all = jax.random.normal(k2, (num_models,), jnp.float32) * 0.02
    meta_w = jax.random.normal(k3, (num_models, 1), jnp.float32) * 0.5
    meta_b = jax.random.normal(k4, (1,), jnp.float32) * 0.5
    return w_all, b_all, meta_w, meta_b


def ensemble2d_reference(x, w_all, b_all, meta_w, meta_b, compute_dtype=None):
    """Plain-JAX reference mirroring the PyTorch forward (optionally with the
    same bf16 rounding of the matmul inputs as the kernel's compute dtype)."""
    B = x.shape[0]
    x_flat = x.reshape(B, -1)
    w = w_all
    if compute_dtype is not None:
        x_flat = x_flat.astype(compute_dtype).astype(jnp.float32)
        w = w.astype(compute_dtype).astype(jnp.float32)
    logits = jnp.dot(x_flat, w, precision=jax.lax.Precision.HIGHEST)
    logits = logits + b_all[None, :]
    probs = jax.nn.sigmoid(logits)
    out = jnp.sum(probs * meta_w[:, 0][None, :], axis=-1, keepdims=True)
    return out + meta_b[None, :]


if __name__ == "__main__":
    key = jax.random.PRNGKey(0)
    kx, kp, kx2, kp2 = jax.random.split(key, 4)

    # --- Small case (single-block fast path), shapes from the module spec.
    B, C, H, W = 2, 4, 16, 16
    NUM_MODELS = 4
    D = C * H * W
    x = jax.random.normal(kx, (B, C, H, W), jnp.float32)
    params = make_params(kp, NUM_MODELS, D)

    out = ensemble2d_forward(x, *params)
    out = jax.block_until_ready(out)
    assert out.shape == (B, 1), out.shape
    ref_matched = ensemble2d_reference(x, *params, compute_dtype=jnp.bfloat16)
    ref_f32 = ensemble2d_reference(x, *params)
    assert jnp.allclose(out, ref_matched, atol=2e-4, rtol=2e-4), (out, ref_matched)
    assert jnp.allclose(out, ref_f32, atol=5e-2, rtol=5e-2), (out, ref_f32)

    # --- Larger case exercising the tiled path: 2 B-blocks (with a partial
    #     last block handled by Pallas output masking, no padding) and a
    #     4-step D reduction with td dividing D exactly.
    B2, C2, H2, W2 = 600, 8, 32, 32
    D2 = C2 * H2 * W2
    x2 = jax.random.normal(kx2, (B2, C2, H2, W2), jnp.float32)
    params2 = make_params(kp2, NUM_MODELS, D2)

    out2 = ensemble2d_forward(x2, *params2)
    out2 = jax.block_until_ready(out2)
    assert out2.shape == (B2, 1), out2.shape
    ref2 = ensemble2d_reference(x2, *params2, compute_dtype=jnp.bfloat16)
    assert jnp.allclose(out2, ref2, atol=2e-4, rtol=2e-4), \
        float(jnp.max(jnp.abs(out2 - ref2)))
    ref2_f32 = ensemble2d_reference(x2, *params2)
    assert jnp.allclose(out2, ref2_f32, atol=5e-2, rtol=5e-2), \
        float(jnp.max(jnp.abs(out2 - ref2_f32)))

    print("KERNEL_OK")
</pallas_src>

<mosaic_0001>
module attributes {stable_mosaic.version = 11 : i64} {
  func.func @_ensemble_small_kernel(%arg0: memref<2x1024xf32, #tpu.memory_space<vmem>>, %arg1: memref<4x1024xf32, #tpu.memory_space<vmem>>, %arg2: memref<1x4xf32, #tpu.memory_space<vmem>>, %arg3: memref<1x4xf32, #tpu.memory_space<vmem>>, %arg4: memref<1x1xf32, #tpu.memory_space<vmem>>, %arg5: memref<2x1xf32, #tpu.memory_space<vmem>>) attributes {dimension_semantics = [], scalar_prefetch = 0 : i64, scratch_operands = 0 : i64, tpu.core_type = #tpu.core_type<tc>} {
    %c0 = arith.constant 0 : index
    %c0_0 = arith.constant 0 : index
    %0 = vector.load %arg0[%c0, %c0_0] : memref<2x1024xf32, #tpu.memory_space<vmem>>, vector<2x1024xf32>
    %1 = arith.truncf %0 : vector<2x1024xf32> to vector<2x1024xbf16>
    %c0_1 = arith.constant 0 : index
    %c0_2 = arith.constant 0 : index
    %2 = vector.load %arg1[%c0_1, %c0_2] : memref<4x1024xf32, #tpu.memory_space<vmem>>, vector<4x1024xf32>
    %3 = arith.truncf %2 : vector<4x1024xf32> to vector<4x1024xbf16>
    %cst = arith.constant dense<0.000000e+00> : vector<2x4xf32>
    %4 = tpu.matmul %1, %3, %cst {dimension_numbers = #tpu.dot_dimension_numbers<[1], [1], [0], [0], [0, 0, 1, 0], [], []>} : vector<2x1024xbf16>, vector<4x1024xbf16>, vector<2x4xf32> -> vector<2x4xf32>
    %c0_3 = arith.constant 0 : index
    %c0_4 = arith.constant 0 : index
    %5 = vector.load %arg2[%c0_3, %c0_4] : memref<1x4xf32, #tpu.memory_space<vmem>>, vector<1x4xf32>
    %6 = vector.broadcast %5 : vector<1x4xf32> to vector<2x4xf32>
    %7 = arith.addf %4, %6 : vector<2x4xf32>
    %8 = arith.negf %7 : vector<2x4xf32>
    %9 = math.exp %8 : vector<2x4xf32>
    %cst_5 = arith.constant 1.000000e+00 : f32
    %10 = vector.broadcast %cst_5 : f32 to vector<2x4xf32>
    %11 = arith.addf %10, %9 : vector<2x4xf32>
    %12 = arith.divf %10, %11 : vector<2x4xf32>
    %c0_6 = arith.constant 0 : index
    %c0_7 = arith.constant 0 : index
    %13 = vector.load %arg3[%c0_6, %c0_7] : memref<1x4xf32, #tpu.memory_space<vmem>>, vector<1x4xf32>
    %14 = vector.broadcast %13 : vector<1x4xf32> to vector<2x4xf32>
    %15 = arith.mulf %12, %14 : vector<2x4xf32>
    %cst_8 = arith.constant dense<0.000000e+00> : vector<2xf32>
    %16 = vector.multi_reduction <add>, %15, %cst_8 [1] : vector<2x4xf32> to vector<2xf32>
    %17 = vector.shape_cast %16 : vector<2xf32> to vector<2x1xf32>
    %c0_9 = arith.constant 0 : index
    %c0_10 = arith.constant 0 : index
    %18 = vector.load %arg4[%c0_9, %c0_10] : memref<1x1xf32, #tpu.memory_space<vmem>>, vector<1x1xf32>
    %19 = vector.broadcast %18 : vector<1x1xf32> to vector<2x1xf32>
    %20 = arith.addf %17, %19 : vector<2x1xf32>
    %c0_11 = arith.constant 0 : index
    %c0_12 = arith.constant 0 : index
    %21 = vector.load %arg5[%c0_11, %c0_12] : memref<2x1xf32, #tpu.memory_space<vmem>>, vector<2x1xf32>
    tpu.vector_store %arg5[%c0_11, %c0_12], %20 {strides = array<i32>} : memref<2x1xf32, #tpu.memory_space<vmem>>, vector<2x1xf32>,
    return
  }
}

</mosaic_0001>

<bundles_post_ra>
// kernel: tpu_custom_call.1
= control target key start
LH: loop header
LB: loop body
LE: loop exit
PB: predicated region body
PF: predicated region fallthrough
CT: control target
= control target key end

     0   :  { %s382_s0 = inlined_call_operand.hbm [shape: f32[2,1024], index: 0, kind: input, shape index: {}]   ;;  %s383_s1 = inlined_call_operand.hbm [shape: f32[4,1024], index: 1, kind: input, shape index: {}]   ;;  %s384_s2 = inlined_call_operand.vmem [shape: f32[1,4], index: 2, kind: input, shape index: {}]   ;;  %s385_s3 = inlined_call_operand.vmem [shape: f32[1,4], index: 3, kind: input, shape index: {}]   ;;  %s386_s4 = inlined_call_operand.<no memory space> [shape: f32[1,1], index: 4, kind: input, shape index: {}]   ;;  %s387_s5 = inlined_call_operand.vmem [shape: f32[2,1], index: 5, kind: output, shape index: {}]  }
   0x1   :  { %v10_v0 = vstv %s386_s4 }
   0x2   :  { %11 = vst [vmem:[#allocation2] sm:$0x1] %v10_v0 }
   0x3   :  { %12 = vsyncpa [#allocation4], 0  ;;  %s19_s22 = sshll.u32 %s382_s0, 4  ;;  %s20_s22 = int_to_ptr.hbm [resolvable:$true] %s19_s22 }
   0x4   :  { %13 = vsyncpa [#allocation6], 0  ;;  %s332_s23 = smov [#allocation3]   ;;  %s30_s27 = sshll.u32 %s383_s1, 4  ;;  %s31_s27 = int_to_ptr.hbm [resolvable:$true] %s30_s27 }
   0x5   :  { %s21_s24 = sshll.u32 %s332_s23, 4  ;;  %s333_s28 = smov [#allocation5]   ;;  %s22_s24 = int_to_ptr.vmem [resolvable:$true] %s21_s24 }
   0x6   :  { %24 = dma.hbm_to_vmem [thread:$0]  %s20_s22, 256, %s22_s24, [#allocation4]  }
   0x7   :  { %s32_s29 = sshll.u32 %s333_s28, 4  ;;  %s33_s29 = int_to_ptr.vmem [resolvable:$true] %s32_s29 }
   0x8   :  { %35 = dma.hbm_to_vmem [thread:$0]  %s31_s27, 512, %s33_s29, [#allocation6]  }
   0x9   :  { %328 = dma.done.wait [#allocation4], 256  }
   0xa   :  { %329 = vsyncadd [#allocation4], 4294967040 }
   0xb   :  { %330 = dma.done.wait [#allocation6], 512  }
   0xc   :  { %331 = vsyncadd [#allocation6], 4294966784  ;;  %v51_v1 = vld [vmem:[#allocation3] sm:$0xff]  ;;  %v52_v2 = vld [vmem:[#allocation3 + $0x8] sm:$0xff]  ;;  %vm253_vm4 = vcmask 25600   ;;  %vm262_vm5 = vcmask 1024  }
   0xd   :  { %55 = vst [vmem:[#allocation1] ss:$4 sm:$0xff] %v51_v1  ;;  %v82_v3 = vld [vmem:[#allocation5] sm:$0xff]  ;;  %v83_v4 = vld [vmem:[#allocation5 + $0x8] sm:$0xff]  ;;  %v85_v8 = vld [vmem:[#allocation5 + $0x18] sm:$0xff] }
   0xe   :  { %57 = vst [vmem:[#allocation1 + $0x20] ss:$4 sm:$0xff] %v52_v2  ;;  %v84_v12 = vld [vmem:[#allocation5 + $0x10] sm:$0xff]  ;;  %v273_v41 = vld [vmem:[%s384_s2] ss:$0 sm:$0xff] }
  0x14   :  { %v58_v5 = vld.sshfl [vmem:[#allocation1] sm:$0xff pattern:$0x73625140]  ;;  %v59_v6 = vld.sshfl [vmem:[#allocation1 + $0x8] sm:$0xff pattern:$0x73625140] }
  0x15   :  { %90 = vst [vmem:[#allocation1] ss:$2 sm:$0xff] %v82_v3  ;;  %v60_v7 = vld.sshfl [vmem:[#allocation1 + $0x10] sm:$0xff pattern:$0x73625140]  ;;  %v74_v27 = vpack.c.bf16 %v58_v5, %v58_v5  ;;  %v75_v30 = vpack.c.bf16 %v59_v6, %v59_v6 }
  0x16   :  { %v61_v9 = vld.sshfl [vmem:[#allocation1 + $0x18] sm:$0xff pattern:$0x73625140]  ;;  %v64_v10 = vld.sshfl [vmem:[#allocation1 + $0x30] sm:$0xff pattern:$0x73625140]  ;;  %v76_v33 = vpack.c.bf16 %v60_v7, %v60_v7 }
  0x17   :  { %92 = vst [vmem:[#allocation1 + $0x10] ss:$2 sm:$0xff] %v83_v4  ;;  %v65_v11 = vld.sshfl [vmem:[#allocation1 + $0x38] sm:$0xff pattern:$0x73625140]  ;;  %v77_v34 = vpack.c.bf16 %v61_v9, %v61_v9  ;;  %v80_v37 = vpack.c.bf16 %v64_v10, %v64_v10 }
  0x18   :  { %96 = vst [vmem:[#allocation1 + $0x30] ss:$2 sm:$0xff] %v85_v8  ;;  %v62_v13 = vld.sshfl [vmem:[#allocation1 + $0x20] sm:$0xff pattern:$0x73625140]  ;;  %v81_v38 = vpack.c.bf16 %v65_v11, %v65_v11 }
  0x19   :  { %v63_v14 = vld.sshfl [vmem:[#allocation1 + $0x28] sm:$0xff pattern:$0x73625140]  ;;  %v78_v35 = vpack.c.bf16 %v62_v13, %v62_v13  ;;  %v274_v10 = vld [vmem:[%s385_s3] ss:$0 sm:$0xff] }
  0x1a   :  { %94 = vst [vmem:[#allocation1 + $0x20] ss:$2 sm:$0xff] %v84_v12  ;;  %v79_v36 = vpack.c.bf16 %v63_v14, %v63_v14 }
  0x1c   :  { %v97_v15 = vld.sshfl [vmem:[#allocation1] sm:$0xff pattern:$0x75316420]  ;;  %v98_v16 = vld.sshfl [vmem:[#allocation1 + $0x8] sm:$0xff pattern:$0x75316420] }
  0x1d   :  { %v113_v17 = vpack.c.bf16 %v97_v15, %v97_v15  ;;  %v114_v18 = vpack.c.bf16 %v98_v16, %v98_v16  ;;  %v275_v16 = vld [vmem:[#allocation2] ss:$0 sm:$0xff] }
  0x1e   :  { %v99_v19 = vld.sshfl [vmem:[#allocation1 + $0x10] sm:$0xff pattern:$0x75316420]  ;;  %v100_v20 = vld.sshfl [vmem:[#allocation1 + $0x18] sm:$0xff pattern:$0x75316420] }
  0x1f   :  { %132 = vmatpush.bf16.xpose.msra.mxu0 %v113_v17  ;;  %145 = vmatpush.bf16.xpose.msra.mxu1 %v114_v18  ;;  %v115_v21 = vpack.c.bf16 %v99_v19, %v99_v19  ;;  %v116_v22 = vpack.c.bf16 %v100_v20, %v100_v20  ;;  %v103_v23 = vld.sshfl [vmem:[#allocation1 + $0x30] sm:$0xff pattern:$0x75316420]  ;;  %v104_v24 = vld.sshfl [vmem:[#allocation1 + $0x38] sm:$0xff pattern:$0x75316420] }
  0x20   :  { %v119_v25 = vpack.c.bf16 %v103_v23, %v103_v23  ;;  %v120_v26 = vpack.c.bf16 %v104_v24, %v104_v24 }
  0x21   :  { %158 = vmatpush.bf16.xpose.msra.mxu2 %v115_v21  ;;  %171 = vmatpush.bf16.xpose.msra.mxu3 %v116_v22  ;;  %v101_v28 = vld.sshfl [vmem:[#allocation1 + $0x20] sm:$0xff pattern:$0x75316420]  ;;  %v102_v29 = vld.sshfl [vmem:[#allocation1 + $0x28] sm:$0xff pattern:$0x75316420] }
  0x22   :  { %v117_v31 = vpack.c.bf16 %v101_v28, %v101_v28  ;;  %v118_v32 = vpack.c.bf16 %v102_v29, %v102_v29 }
  0x26   :  { %133 = vmatmul.bf16.vlgmr.msra.gmra.mxu0 %v74_v27  ;;  %146 = vmatmul.bf16.vlgmr.msra.gmra.mxu1 %v75_v30 }
  0x27   :  { %184 = vmatpush.bf16.xpose.msrb.mxu0 %v117_v31  ;;  %197 = vmatpush.bf16.xpose.msrb.mxu1 %v118_v32 }
  0x28   :  { %159 = vmatmul.bf16.vlgmr.msra.gmra.mxu2 %v76_v33  ;;  %172 = vmatmul.bf16.vlgmr.msra.gmra.mxu3 %v77_v34 }
  0x29   :  { %210 = vmatpush.bf16.xpose.msrb.mxu2 %v119_v25  ;;  %223 = vmatpush.bf16.xpose.msrb.mxu3 %v120_v26 }
  0x36   :  { %185 = vmatmul.bf16.vlgmr.msrb.gmra.mxu0 %v78_v35  ;;  %198 = vmatmul.bf16.vlgmr.msrb.gmra.mxu1 %v79_v36 }
  0x38   :  { %211 = vmatmul.bf16.vlgmr.msrb.gmra.mxu2 %v80_v37  ;;  %224 = vmatmul.bf16.vlgmr.msrb.gmra.mxu3 %v81_v38 }
  0xa3   :  { %v134_v39 = vpop.f32.mrf.mxu0  ;;  %v147_v40 = vpop.f32.mrf.mxu1 }
  0xa4   :  { %v135_v42 = vadd.f32 %v273_v41, %v134_v39 }
  0xa6   :  { %v148_v45 = vadd.f32 %v147_v40, %v135_v42 }
  0xab   :  { %v160_v43 = vpop.f32.mrf.mxu2  ;;  %v173_v44 = vpop.f32.mrf.mxu3 }
  0xac   :  { %v136_v46 = vpop.f32.mrf.mxu0  ;;  %v149_v47 = vpop.f32.mrf.mxu1  ;;  %v161_v48 = vadd.f32 %v160_v43, %v148_v45 }
  0xae   :  { %v174_v51 = vadd.f32 %v173_v44, %v161_v48 }
  0xb3   :  { %v162_v49 = vpop.f32.mrf.mxu2  ;;  %v175_v50 = vpop.f32.mrf.mxu3 }
  0xb4   :  { %v186_v52 = vpop.f32.mrf.mxu0  ;;  %v199_v53 = vpop.f32.mrf.mxu1 }
  0xb5   :  { %v187_v54 = vadd.f32 %v186_v52, %v174_v51 }
  0xb7   :  { %v200_v55 = vadd.f32 %v199_v53, %v187_v54 }
  0xbb   :  { %v212_v56 = vpop.f32.mrf.mxu2  ;;  %v225_v57 = vpop.f32.mrf.mxu3 }
  0xbc   :  { %v213_v58 = vadd.f32 %v212_v56, %v200_v55  ;;  %v188_v59 = vpop.f32.mrf.mxu0  ;;  %v201_v60 = vpop.f32.mrf.mxu1 }
  0xbe   :  { %v226_v61 = vadd.f32 %v225_v57, %v213_v58 }
  0xc0   :  { %v270_v62 = vmul.f32 -1.442695, %v226_v61 }
  0xc2   :  { %276 = vpow2.f32 %v270_v62 }
  0xc3   :  { %v214_v63 = vpop.f32.mrf.mxu2  ;;  %v227_v0 = vpop.f32.mrf.mxu3 }
  0xc8   :  { %v277_v1 = vpop.eup %276 }
  0xc9   :  { %v232_v2 = vadd.f32 1.0, %v277_v1 }
  0xcb   :  { %278 = vrcp.f32 %v232_v2  ;;  %v244_v6 = vand.u32 2147483648, %v232_v2  ;;  %v242_v8 = vand.u32 2147483647, %v232_v2  ;;  %vm238_vm1 = vweird.f32 %v232_v2 }
  0xcd   :  { %v245_v11 = vor.u32 1.1754944e-38, %v244_v6  ;;  %vm243_vm3 = vcmp.eq.f32.partialorder %v242_v8, 8.507059e+37 }
  0xd1   :  { %v279_v3 = vpop.eup %278 }
  0xd2   :  { %v234_v4 = vmul.f32 %v279_v3, %v232_v2  ;;  %vm239_vm0 = vweird.f32 %v279_v3 }
  0xd3   :  { %vm240_vm2 = vmor %vm238_vm1, %vm239_vm0 }
  0xd4   :  { %v235_v5 = vsub.f32 1.0, %v234_v4 }
  0xd6   :  { %v236_v7 = vmul.f32 %v279_v3, %v235_v5 }
  0xd8   :  { %v237_v9 = vadd.f32 %v279_v3, %v236_v7 }
  0xda   :  { %v241_v12 = vsel %vm240_vm2, %v279_v3, %v237_v9 }
  0xdb   :  { %v246_v13 = vsel %vm243_vm3, %v245_v11, %v241_v12 }
  0xdc   :  { %v252_v14 = vmul.f32 %v274_v10, %v246_v13 }
  0xde   :  { %v254_v15 = vsel %vm253_vm4, %v252_v14, 0.0 }
  0xdf   :  { %255 = vadd.xlane.f32.xlu0 %v254_v15 }
 0x152   :  { %v256_v17 = vpop.xlane.xlu0 %255 }
 0x153   :  { %v261_v18 = vadd.f32 %v275_v16, %v256_v17 }
 0x155   :  { %263 = vst.msk [vmem:[%s387_s5] sm:$0x3] %vm262_vm5, %v261_v18 }
 0x156   :  { %268 = vsyncpa [#allocation4], 1 }
 0x157   :  { %269 = vsyncpa [#allocation6], 1 }

</bundles_post_ra>
